<compile_context>
chip_gen: v6e
topology: v6e:2x2x1
jax: 0.10.0
libtpu: 0.0.40
codegen_flags: <defaults>
</compile_context>

<pallas_src>
import functools

import jax
import jax.numpy as jnp
from jax.experimental import pallas as pl
from jax.experimental.pallas import tpu as pltpu


def mlp_kernel(x_ref, w1_ref, b1_ref, w3_ref, b3_ref, o_ref, *, batch, seq):
    """Fused: linear1 -> relu -> mean(dim=1) -> linear3.

    x_ref : (B*S, D) f32   (rows pre-flattened in the wrapper)
    w1_ref: (D, H)   f32   (transposed PyTorch weight)
    b1_ref: (1, H)   f32
    w3_ref: (H, C)   f32   (transposed PyTorch weight)
    b3_ref: (1, C)   f32
    o_ref : (B, C)   f32
    """
    # One (B*S, D) @ (D, H) MXU matmul with f32 accumulation.
    h = jnp.dot(x_ref[...], w1_ref[...], preferred_element_type=jnp.float32)

    # Bias + ReLU; (1, H) broadcasts against (B*S, H) directly (VPU).
    h = jnp.maximum(h + b1_ref[...], 0.0)

    # Mean over the sequence axis: sum then a single scalar multiply on the
    # tiny (B, H) result. The sublane-dim split (B*S -> B, S) is
    # layout-preserving at these sizes.
    m = jnp.sum(h.reshape(batch, seq, h.shape[-1]), axis=1)        # (B, H)
    m = m * (1.0 / seq)

    # linear3 + bias.
    out = jnp.dot(m, w3_ref[...], preferred_element_type=jnp.float32)
    out = out + b3_ref[...]

    o_ref[...] = out.astype(o_ref.dtype)


@jax.jit
def mlp_forward(x, w1, b1, w3, b3):
    B, S, D = x.shape
    H = w1.shape[1]
    C = w3.shape[1]

    # Collapse the batched matmul into a single 2D matmul (free reshape of a
    # contiguous array).
    x2d = x.reshape(B * S, D)
    b1_2d = b1.reshape(1, H)
    b3_2d = b3.reshape(1, C)

    flops = 2 * B * S * D * H + 2 * B * H * C
    bytes_accessed = 4 * (x2d.size + w1.size + H + w3.size + C + B * C)

    vmem = pl.BlockSpec(memory_space=pltpu.MemorySpace.VMEM)
    kernel = functools.partial(mlp_kernel, batch=B, seq=S)
    return pl.pallas_call(
        kernel,
        out_shape=jax.ShapeDtypeStruct((B, C), jnp.float32),
        in_specs=[vmem, vmem, vmem, vmem, vmem],
        out_specs=vmem,
        cost_estimate=pl.CostEstimate(
            flops=flops, transcendentals=0, bytes_accessed=bytes_accessed
        ),
    )(x2d, w1, b1_2d, w3, b3_2d)


def reference_forward(x, w1, b1, w3, b3):
    h = jnp.einsum("bsd,dh->bsh", x, w1) + b1
    h = jnp.maximum(h, 0.0)
    m = jnp.mean(h, axis=1)
    return jnp.dot(m, w3) + b3


if __name__ == "__main__":
    # Config (mlp_conditional=False -> input_dim = 1152)
    INPUT_DIM = 1152
    HIDDEN = 32          # config.hidden_channels
    N_CLASSES = 10       # config.n_classes
    B, S = 2, 8

    key = jax.random.PRNGKey(0)
    kx, kw1, kb1, kw3, kb3 = jax.random.split(key, 5)

    x = jax.random.normal(kx, (B, S, INPUT_DIM), dtype=jnp.float32)

    # Deterministic parameter init mimicking nn.Linear's uniform(-1/sqrt(fan_in), +)
    bound1 = 1.0 / (INPUT_DIM ** 0.5)
    w1 = jax.random.uniform(kw1, (INPUT_DIM, HIDDEN), jnp.float32,
                            minval=-bound1, maxval=bound1)
    b1 = jax.random.uniform(kb1, (HIDDEN,), jnp.float32,
                            minval=-bound1, maxval=bound1)

    bound3 = 1.0 / (HIDDEN ** 0.5)
    w3 = jax.random.uniform(kw3, (HIDDEN, N_CLASSES), jnp.float32,
                            minval=-bound3, maxval=bound3)
    b3 = jax.random.uniform(kb3, (N_CLASSES,), jnp.float32,
                            minval=-bound3, maxval=bound3)

    out = mlp_forward(x, w1, b1, w3, b3)
    out = jax.block_until_ready(out)

    ref = reference_forward(x, w1, b1, w3, b3)
    assert out.shape == (B, N_CLASSES), out.shape
    assert jnp.allclose(out, ref, atol=1e-4, rtol=1e-4), \
        f"max abs err {jnp.max(jnp.abs(out - ref))}"

    print("KERNEL_OK")
</pallas_src>

<mosaic_0001>
module attributes {stable_mosaic.version = 11 : i64} {
  func.func @mlp_kernel(%arg0: memref<16x1152xf32, #tpu.memory_space<vmem>>, %arg1: memref<1152x32xf32, #tpu.memory_space<vmem>>, %arg2: memref<1x32xf32, #tpu.memory_space<vmem>>, %arg3: memref<32x10xf32, #tpu.memory_space<vmem>>, %arg4: memref<1x10xf32, #tpu.memory_space<vmem>>, %arg5: memref<2x10xf32, #tpu.memory_space<vmem>>) attributes {dimension_semantics = [], scalar_prefetch = 0 : i64, scratch_operands = 0 : i64, tpu.core_type = #tpu.core_type<tc>} {
    %c0 = arith.constant 0 : index
    %c0_0 = arith.constant 0 : index
    %0 = vector.load %arg0[%c0, %c0_0] : memref<16x1152xf32, #tpu.memory_space<vmem>>, vector<16x1152xf32>
    %c0_1 = arith.constant 0 : index
    %c0_2 = arith.constant 0 : index
    %1 = vector.load %arg1[%c0_1, %c0_2] : memref<1152x32xf32, #tpu.memory_space<vmem>>, vector<1152x32xf32>
    %cst = arith.constant dense<0.000000e+00> : vector<16x32xf32>
    %2 = tpu.matmul %0, %1, %cst {dimension_numbers = #tpu.dot_dimension_numbers<[1], [0], [0], [1], [0, 0, 1, 1], [], []>} : vector<16x1152xf32>, vector<1152x32xf32>, vector<16x32xf32> -> vector<16x32xf32>
    %c0_3 = arith.constant 0 : index
    %c0_4 = arith.constant 0 : index
    %3 = vector.load %arg2[%c0_3, %c0_4] : memref<1x32xf32, #tpu.memory_space<vmem>>, vector<1x32xf32>
    %4 = vector.broadcast %3 : vector<1x32xf32> to vector<16x32xf32>
    %5 = arith.addf %2, %4 : vector<16x32xf32>
    %cst_5 = arith.constant 0.000000e+00 : f32
    %6 = vector.broadcast %cst_5 : f32 to vector<16x32xf32>
    %7 = arith.maximumf %5, %6 : vector<16x32xf32>
    %8 = vector.shape_cast %7 : vector<16x32xf32> to vector<2x8x32xf32>
    %cst_6 = arith.constant dense<0.000000e+00> : vector<2x32xf32>
    %9 = vector.multi_reduction <add>, %8, %cst_6 [1] : vector<2x8x32xf32> to vector<2x32xf32>
    %cst_7 = arith.constant 1.250000e-01 : f32
    %10 = vector.broadcast %cst_7 : f32 to vector<2x32xf32>
    %11 = arith.mulf %9, %10 : vector<2x32xf32>
    %c0_8 = arith.constant 0 : index
    %c0_9 = arith.constant 0 : index
    %12 = vector.load %arg3[%c0_8, %c0_9] : memref<32x10xf32, #tpu.memory_space<vmem>>, vector<32x10xf32>
    %cst_10 = arith.constant dense<0.000000e+00> : vector<2x10xf32>
    %13 = tpu.matmul %11, %12, %cst_10 {dimension_numbers = #tpu.dot_dimension_numbers<[1], [0], [0], [1], [0, 0, 1, 1], [], []>} : vector<2x32xf32>, vector<32x10xf32>, vector<2x10xf32> -> vector<2x10xf32>
    %c0_11 = arith.constant 0 : index
    %c0_12 = arith.constant 0 : index
    %14 = vector.load %arg4[%c0_11, %c0_12] : memref<1x10xf32, #tpu.memory_space<vmem>>, vector<1x10xf32>
    %15 = vector.broadcast %14 : vector<1x10xf32> to vector<2x10xf32>
    %16 = arith.addf %13, %15 : vector<2x10xf32>
    %c0_13 = arith.constant 0 : index
    %c0_14 = arith.constant 0 : index
    %17 = vector.load %arg5[%c0_13, %c0_14] : memref<2x10xf32, #tpu.memory_space<vmem>>, vector<2x10xf32>
    tpu.vector_store %arg5[%c0_13, %c0_14], %16 {strides = array<i32>} : memref<2x10xf32, #tpu.memory_space<vmem>>, vector<2x10xf32>,
    return
  }
}

</mosaic_0001>

<bundles_post_ra>
// kernel: mlp_forward.1
= control target key start
LH: loop header
LB: loop body
LE: loop exit
PB: predicated region body
PF: predicated region fallthrough
CT: control target
= control target key end

     0   :  { %s1479_s0 = inlined_call_operand.vmem [shape: f32[16,1152], index: 0, kind: input, shape index: {}]   ;;  %s1480_s1 = inlined_call_operand.vmem [shape: f32[1152,32], index: 1, kind: input, shape index: {}]   ;;  %s1481_s2 = inlined_call_operand.vmem [shape: f32[1,32], index: 2, kind: input, shape index: {}]   ;;  %s1482_s3 = inlined_call_operand.vmem [shape: f32[32,10], index: 3, kind: input, shape index: {}]   ;;  %s1483_s4 = inlined_call_operand.vmem [shape: f32[1,10], index: 4, kind: input, shape index: {}]   ;;  %s1484_s5 = inlined_call_operand.hbm [shape: f32[2,10], index: 5, kind: output, shape index: {}]  }
   0x1   :  { %v70_v0 = vld [vmem:[%s1480_s1 + $0xf8] sm:$0xff]  ;;  %v69_v2 = vld [vmem:[%s1480_s1 + $0xf0] sm:$0xff]  ;;  %v68_v6 = vld [vmem:[%s1480_s1 + $0xe8] sm:$0xff] }
   0x2   :  { %v54_v1 = vld [vmem:[%s1480_s1 + $0x78] sm:$0xff]  ;;  %690 = vmatprep.subr.mxu0 %v70_v0  ;;  %v53_v4 = vld [vmem:[%s1480_s1 + $0x70] sm:$0xff]  ;;  %v52_v8 = vld [vmem:[%s1480_s1 + $0x68] sm:$0xff] }
   0x3   :  { %v102_v3 = vld [vmem:[%s1480_s1 + $0x1f8] sm:$0xff]  ;;  %691 = vmatpush3.msra.mxu0 %v54_v1  ;;  %v101_v7 = vld [vmem:[%s1480_s1 + $0x1f0] sm:$0xff]  ;;  %v100_v10 = vld [vmem:[%s1480_s1 + $0x1e8] sm:$0xff] }
   0x4   :  { %v86_v5 = vld [vmem:[%s1480_s1 + $0x178] sm:$0xff]  ;;  %728 = vmatprep.subr.mxu1 %v102_v3  ;;  %692 = vmatprep.subr.mxu0 %v69_v2  ;;  %v85_v9 = vld [vmem:[%s1480_s1 + $0x170] sm:$0xff]  ;;  %v67_v11 = vld [vmem:[%s1480_s1 + $0xe0] sm:$0xff] }
   0x5   :  { %729 = vmatpush3.msra.mxu1 %v86_v5  ;;  %693 = vmatpush3.msra.mxu0 %v53_v4  ;;  %v84_v12 = vld [vmem:[%s1480_s1 + $0x168] sm:$0xff]  ;;  %v51_v13 = vld [vmem:[%s1480_s1 + $0x60] sm:$0xff]  ;;  %v66_v15 = vld [vmem:[%s1480_s1 + $0xd8] sm:$0xff] }
   0x6   :  { %730 = vmatprep.subr.mxu1 %v101_v7  ;;  %694 = vmatprep.subr.mxu0 %v68_v6  ;;  %v99_v14 = vld [vmem:[%s1480_s1 + $0x1e0] sm:$0xff]  ;;  %v50_v17 = vld [vmem:[%s1480_s1 + $0x58] sm:$0xff]  ;;  %v65_v19 = vld [vmem:[%s1480_s1 + $0xd0] sm:$0xff] }
   0x7   :  { %731 = vmatpush3.msra.mxu1 %v85_v9  ;;  %695 = vmatpush3.msra.mxu0 %v52_v8  ;;  %v83_v16 = vld [vmem:[%s1480_s1 + $0x160] sm:$0xff]  ;;  %v98_v18 = vld [vmem:[%s1480_s1 + $0x1d8] sm:$0xff]  ;;  %v49_v21 = vld [vmem:[%s1480_s1 + $0x50] sm:$0xff] }
   0x8   :  { %732 = vmatprep.subr.mxu1 %v100_v10  ;;  %696 = vmatprep.subr.mxu0 %v67_v11  ;;  %v82_v20 = vld [vmem:[%s1480_s1 + $0x158] sm:$0xff]  ;;  %v97_v22 = vld [vmem:[%s1480_s1 + $0x1d0] sm:$0xff]  ;;  %v64_v23 = vld [vmem:[%s1480_s1 + $0xc8] sm:$0xff] }
   0x9   :  { %733 = vmatpush3.msra.mxu1 %v84_v12  ;;  %697 = vmatpush3.msra.mxu0 %v51_v13  ;;  %v81_v24 = vld [vmem:[%s1480_s1 + $0x150] sm:$0xff]  ;;  %v48_v25 = vld [vmem:[%s1480_s1 + $0x48] sm:$0xff]  ;;  %v63_v27 = vld [vmem:[%s1480_s1 + $0xc0] sm:$0xff] }
   0xa   :  { %734 = vmatprep.subr.mxu1 %v99_v14  ;;  %698 = vmatprep.subr.mxu0 %v66_v15  ;;  %v96_v26 = vld [vmem:[%s1480_s1 + $0x1c8] sm:$0xff]  ;;  %v47_v29 = vld [vmem:[%s1480_s1 + $0x40] sm:$0xff]  ;;  %v62_v31 = vld [vmem:[%s1480_s1 + $0xb8] sm:$0xff] }
   0xb   :  { %735 = vmatpush3.msra.mxu1 %v83_v16  ;;  %699 = vmatpush3.msra.mxu0 %v50_v17  ;;  %v80_v28 = vld [vmem:[%s1480_s1 + $0x148] sm:$0xff]  ;;  %v95_v30 = vld [vmem:[%s1480_s1 + $0x1c0] sm:$0xff]  ;;  %v46_v33 = vld [vmem:[%s1480_s1 + $0x38] sm:$0xff] }
   0xc   :  { %736 = vmatprep.subr.mxu1 %v98_v18  ;;  %700 = vmatprep.subr.mxu0 %v65_v19  ;;  %v79_v32 = vld [vmem:[%s1480_s1 + $0x140] sm:$0xff]  ;;  %v94_v34 = vld [vmem:[%s1480_s1 + $0x1b8] sm:$0xff]  ;;  %v61_v35 = vld [vmem:[%s1480_s1 + $0xb0] sm:$0xff] }
   0xd   :  { %737 = vmatpush3.msra.mxu1 %v82_v20  ;;  %701 = vmatpush3.msra.mxu0 %v49_v21  ;;  %v78_v36 = vld [vmem:[%s1480_s1 + $0x138] sm:$0xff]  ;;  %v45_v37 = vld [vmem:[%s1480_s1 + $0x30] sm:$0xff]  ;;  %v60_v39 = vld [vmem:[%s1480_s1 + $0xa8] sm:$0xff] }
   0xe   :  { %738 = vmatprep.subr.mxu1 %v97_v22  ;;  %702 = vmatprep.subr.mxu0 %v64_v23  ;;  %v93_v38 = vld [vmem:[%s1480_s1 + $0x1b0] sm:$0xff]  ;;  %v44_v41 = vld [vmem:[%s1480_s1 + $0x28] sm:$0xff]  ;;  %v59_v43 = vld [vmem:[%s1480_s1 + $0xa0] sm:$0xff] }
   0xf   :  { %739 = vmatpush3.msra.mxu1 %v81_v24  ;;  %703 = vmatpush3.msra.mxu0 %v48_v25  ;;  %v77_v40 = vld [vmem:[%s1480_s1 + $0x130] sm:$0xff]  ;;  %v92_v42 = vld [vmem:[%s1480_s1 + $0x1a8] sm:$0xff]  ;;  %v43_v45 = vld [vmem:[%s1480_s1 + $0x20] sm:$0xff] }
  0x10   :  { %740 = vmatprep.subr.mxu1 %v96_v26  ;;  %704 = vmatprep.subr.mxu0 %v63_v27  ;;  %v76_v44 = vld [vmem:[%s1480_s1 + $0x128] sm:$0xff]  ;;  %v91_v46 = vld [vmem:[%s1480_s1 + $0x1a0] sm:$0xff]  ;;  %v58_v47 = vld [vmem:[%s1480_s1 + $0x98] sm:$0xff] }
  0x11   :  { %741 = vmatpush3.msra.mxu1 %v80_v28  ;;  %705 = vmatpush3.msra.mxu0 %v47_v29  ;;  %v75_v48 = vld [vmem:[%s1480_s1 + $0x120] sm:$0xff]  ;;  %v42_v49 = vld [vmem:[%s1480_s1 + $0x18] sm:$0xff]  ;;  %v57_v51 = vld [vmem:[%s1480_s1 + $0x90] sm:$0xff] }
  0x12   :  { %742 = vmatprep.subr.mxu1 %v95_v30  ;;  %706 = vmatprep.subr.mxu0 %v62_v31  ;;  %v90_v50 = vld [vmem:[%s1480_s1 + $0x198] sm:$0xff]  ;;  %v41_v53 = vld [vmem:[%s1480_s1 + $0x10] sm:$0xff]  ;;  %v56_v55 = vld [vmem:[%s1480_s1 + $0x88] sm:$0xff] }
  0x13   :  { %743 = vmatpush3.msra.mxu1 %v79_v32  ;;  %707 = vmatpush3.msra.mxu0 %v46_v33  ;;  %v74_v52 = vld [vmem:[%s1480_s1 + $0x118] sm:$0xff]  ;;  %v89_v54 = vld [vmem:[%s1480_s1 + $0x190] sm:$0xff]  ;;  %v40_v57 = vld [vmem:[%s1480_s1 + $0x8] sm:$0xff] }
  0x14   :  { %744 = vmatprep.subr.mxu1 %v94_v34  ;;  %708 = vmatprep.subr.mxu0 %v61_v35  ;;  %v73_v56 = vld [vmem:[%s1480_s1 + $0x110] sm:$0xff]  ;;  %v88_v58 = vld [vmem:[%s1480_s1 + $0x188] sm:$0xff]  ;;  %v55_v59 = vld [vmem:[%s1480_s1 + $0x80] sm:$0xff] }
  0x15   :  { %745 = vmatpush3.msra.mxu1 %v78_v36  ;;  %709 = vmatpush3.msra.mxu0 %v45_v37  ;;  %v22_v60 = vld [vmem:[%s1479_s0 + $0x8] sm:$0xff]  ;;  %v39_v61 = vld [vmem:[%s1480_s1] sm:$0xff]  ;;  %v134_v1 = vld [vmem:[%s1480_s1 + $0x2f8] sm:$0xff] }
  0x16   :  { %746 = vmatprep.subr.mxu1 %v93_v38  ;;  %710 = vmatprep.subr.mxu0 %v60_v39  ;;  %v72_v62 = vld [vmem:[%s1480_s1 + $0x108] sm:$0xff]  ;;  %v21_v63 = vld [vmem:[%s1479_s0] sm:$0xff]  ;;  %v24_v3 = vld [vmem:[%s1479_s0 + $0x18] sm:$0xff] }
  0x17   :  { %747 = vmatpush3.msra.mxu1 %v77_v40  ;;  %711 = vmatpush3.msra.mxu0 %v44_v41  ;;  %v87_v0 = vld [vmem:[%s1480_s1 + $0x180] sm:$0xff]  ;;  %v118_v4 = vld [vmem:[%s1480_s1 + $0x278] sm:$0xff]  ;;  %v23_v5 = vld [vmem:[%s1479_s0 + $0x10] sm:$0xff] }
  0x18   :  { %748 = vmatprep.subr.mxu1 %v92_v42  ;;  %712 = vmatprep.subr.mxu0 %v59_v43  ;;  %v71_v2 = vld [vmem:[%s1480_s1 + $0x100] sm:$0xff]  ;;  %v133_v6 = vld [vmem:[%s1480_s1 + $0x2f0] sm:$0xff]  ;;  %v166_v7 = vld [vmem:[%s1480_s1 + $0x3f8] sm:$0xff] }
  0x19   :  { %749 = vmatpush3.msra.mxu1 %v76_v44  ;;  %713 = vmatpush3.msra.mxu0 %v43_v45  ;;  %v117_v8 = vld [vmem:[%s1480_s1 + $0x270] sm:$0xff]  ;;  %v150_v9 = vld [vmem:[%s1480_s1 + $0x378] sm:$0xff]  ;;  %v132_v10 = vld [vmem:[%s1480_s1 + $0x2e8] sm:$0xff] }
  0x1a   :  { %750 = vmatprep.subr.mxu1 %v91_v46  ;;  %714 = vmatprep.subr.mxu0 %v58_v47  ;;  %v165_v11 = vld [vmem:[%s1480_s1 + $0x3f0] sm:$0xff]  ;;  %v116_v12 = vld [vmem:[%s1480_s1 + $0x268] sm:$0xff]  ;;  %v131_v14 = vld [vmem:[%s1480_s1 + $0x2e0] sm:$0xff] }
  0x1b   :  { %751 = vmatpush3.msra.mxu1 %v75_v48  ;;  %715 = vmatpush3.msra.mxu0 %v42_v49  ;;  %v149_v13 = vld [vmem:[%s1480_s1 + $0x370] sm:$0xff]  ;;  %v164_v15 = vld [vmem:[%s1480_s1 + $0x3e8] sm:$0xff]  ;;  %v115_v16 = vld [vmem:[%s1480_s1 + $0x260] sm:$0xff] }
  0x1c   :  { %752 = vmatprep.subr.mxu1 %v90_v50  ;;  %716 = vmatprep.subr.mxu0 %v57_v51  ;;  %v148_v17 = vld [vmem:[%s1480_s1 + $0x368] sm:$0xff]  ;;  %v130_v18 = vld [vmem:[%s1480_s1 + $0x2d8] sm:$0xff]  ;;  %v163_v19 = vld [vmem:[%s1480_s1 + $0x3e0] sm:$0xff] }
  0x1d   :  { %753 = vmatpush3.msra.mxu1 %v74_v52  ;;  %717 = vmatpush3.msra.mxu0 %v41_v53  ;;  %v114_v20 = vld [vmem:[%s1480_s1 + $0x258] sm:$0xff]  ;;  %v147_v21 = vld [vmem:[%s1480_s1 + $0x360] sm:$0xff]  ;;  %v129_v22 = vld [vmem:[%s1480_s1 + $0x2d0] sm:$0xff] }
  0x1e   :  { %754 = vmatprep.subr.mxu1 %v89_v54  ;;  %718 = vmatprep.subr.mxu0 %v56_v55  ;;  %v162_v23 = vld [vmem:[%s1480_s1 + $0x3d8] sm:$0xff]  ;;  %v113_v24 = vld [vmem:[%s1480_s1 + $0x250] sm:$0xff]  ;;  %v128_v26 = vld [vmem:[%s1480_s1 + $0x2c8] sm:$0xff] }
  0x1f   :  { %755 = vmatpush3.msra.mxu1 %v73_v56  ;;  %719 = vmatpush3.msra.mxu0 %v40_v57  ;;  %v146_v25 = vld [vmem:[%s1480_s1 + $0x358] sm:$0xff]  ;;  %v161_v27 = vld [vmem:[%s1480_s1 + $0x3d0] sm:$0xff]  ;;  %v112_v28 = vld [vmem:[%s1480_s1 + $0x248] sm:$0xff] }
  0x20   :  { %756 = vmatprep.subr.mxu1 %v88_v58  ;;  %720 = vmatprep.subr.mxu0 %v55_v59  ;;  %v145_v29 = vld [vmem:[%s1480_s1 + $0x350] sm:$0xff]  ;;  %v127_v30 = vld [vmem:[%s1480_s1 + $0x2c0] sm:$0xff]  ;;  %v160_v31 = vld [vmem:[%s1480_s1 + $0x3c8] sm:$0xff] }
  0x21   :  { %254 = vmatprep.mubr.f32.mxu0 %v22_v60  ;;  %721 = vmatpush3.msra.mxu0 %v39_v61  ;;  %v111_v32 = vld [vmem:[%s1480_s1 + $0x240] sm:$0xff]  ;;  %v144_v33 = vld [vmem:[%s1480_s1 + $0x348] sm:$0xff]  ;;  %v126_v34 = vld [vmem:[%s1480_s1 + $0x2b8] sm:$0xff] }
  0x22   :  { %757 = vmatpush3.msra.mxu1 %v72_v62  ;;  %255 = vmatmul.mubr.f32.vlgmr.msra.gmra.mxu0 %v21_v63  ;;  %v159_v35 = vld [vmem:[%s1480_s1 + $0x3c0] sm:$0xff]  ;;  %v110_v36 = vld [vmem:[%s1480_s1 + $0x238] sm:$0xff]  ;;  %v125_v38 = vld [vmem:[%s1480_s1 + $0x2b0] sm:$0xff] }
  0x23   :  { %758 = vmatprep.subr.mxu1 %v87_v0  ;;  %766 = vmatprep.subr.mxu0 %v134_v1  ;;  %v143_v37 = vld [vmem:[%s1480_s1 + $0x340] sm:$0xff]  ;;  %v158_v39 = vld [vmem:[%s1480_s1 + $0x3b8] sm:$0xff]  ;;  %v109_v40 = vld [vmem:[%s1480_s1 + $0x230] sm:$0xff] }
  0x24   :  { %759 = vmatpush3.msra.mxu1 %v71_v2  ;;  %329 = vmatprep.mubr.f32.mxu1 %v24_v3  ;;  %v142_v41 = vld [vmem:[%s1480_s1 + $0x338] sm:$0xff]  ;;  %v124_v42 = vld [vmem:[%s1480_s1 + $0x2a8] sm:$0xff]  ;;  %v157_v43 = vld [vmem:[%s1480_s1 + $0x3b0] sm:$0xff] }
  0x25   :  { %767 = vmatpush3.msra.mxu0 %v118_v4  ;;  %330 = vmatmul.mubr.f32.vlgmr.msra.gmra.mxu1 %v23_v5  ;;  %v108_v44 = vld [vmem:[%s1480_s1 + $0x228] sm:$0xff]  ;;  %v141_v45 = vld [vmem:[%s1480_s1 + $0x330] sm:$0xff]  ;;  %v123_v46 = vld [vmem:[%s1480_s1 + $0x2a0] sm:$0xff] }
  0x26   :  { %768 = vmatprep.subr.mxu0 %v133_v6  ;;  %804 = vmatprep.subr.mxu1 %v166_v7  ;;  %v156_v47 = vld [vmem:[%s1480_s1 + $0x3a8] sm:$0xff]  ;;  %v107_v48 = vld [vmem:[%s1480_s1 + $0x220] sm:$0xff] }
  0x27   :  { %769 = vmatpush3.msra.mxu0 %v117_v8  ;;  %805 = vmatpush3.msra.mxu1 %v150_v9 }
  0x28   :  { %770 = vmatprep.subr.mxu0 %v132_v10  ;;  %806 = vmatprep.subr.mxu1 %v165_v11 }
  0x29   :  { %771 = vmatpush3.msra.mxu0 %v116_v12  ;;  %807 = vmatpush3.msra.mxu1 %v149_v13 }
  0x2a   :  { %772 = vmatprep.subr.mxu0 %v131_v14  ;;  %808 = vmatprep.subr.mxu1 %v164_v15 }
  0x2b   :  { %773 = vmatpush3.msra.mxu0 %v115_v16  ;;  %809 = vmatpush3.msra.mxu1 %v148_v17 }
  0x2c   :  { %774 = vmatprep.subr.mxu0 %v130_v18  ;;  %810 = vmatprep.subr.mxu1 %v163_v19 }
  0x2d   :  { %775 = vmatpush3.msra.mxu0 %v114_v20  ;;  %811 = vmatpush3.msra.mxu1 %v147_v21 }
  0x2e   :  { %776 = vmatprep.subr.mxu0 %v129_v22  ;;  %812 = vmatprep.subr.mxu1 %v162_v23 }
  0x2f   :  { %777 = vmatpush3.msra.mxu0 %v113_v24  ;;  %813 = vmatpush3.msra.mxu1 %v146_v25 }
  0x30   :  { %778 = vmatprep.subr.mxu0 %v128_v26  ;;  %814 = vmatprep.subr.mxu1 %v161_v27 }
  0x31   :  { %779 = vmatpush3.msra.mxu0 %v112_v28  ;;  %815 = vmatpush3.msra.mxu1 %v145_v29 }
  0x32   :  { %780 = vmatprep.subr.mxu0 %v127_v30  ;;  %816 = vmatprep.subr.mxu1 %v160_v31 }
  0x33   :  { %781 = vmatpush3.msra.mxu0 %v111_v32  ;;  %817 = vmatpush3.msra.mxu1 %v144_v33 }
  0x34   :  { %782 = vmatprep.subr.mxu0 %v126_v34  ;;  %818 = vmatprep.subr.mxu1 %v159_v35 }
  0x35   :  { %783 = vmatpush3.msra.mxu0 %v110_v36  ;;  %819 = vmatpush3.msra.mxu1 %v143_v37 }
  0x36   :  { %784 = vmatprep.subr.mxu0 %v125_v38  ;;  %820 = vmatprep.subr.mxu1 %v158_v39 }
  0x37   :  { %785 = vmatpush3.msra.mxu0 %v109_v40  ;;  %821 = vmatpush3.msra.mxu1 %v142_v41 }
  0x38   :  { %786 = vmatprep.subr.mxu0 %v124_v42 }
  0x39   :  { %10 = vsyncpa [#allocation3], 0  ;;  %822 = vmatprep.subr.mxu1 %v157_v43  ;;  %787 = vmatpush3.msra.mxu0 %v108_v44  ;;  %v140_v49 = vld [vmem:[%s1480_s1 + $0x328] sm:$0xff]  ;;  %v122_v50 = vld [vmem:[%s1480_s1 + $0x298] sm:$0xff]  ;;  %v936_v34 = vmov 0.0   ;;  %vm937_vm0 = vmmov 0  }
  0x3a   :  { %823 = vmatpush3.msra.mxu1 %v141_v45  ;;  %788 = vmatprep.subr.mxu0 %v123_v46  ;;  %v155_v51 = vld [vmem:[%s1480_s1 + $0x3a0] sm:$0xff]  ;;  %v106_v52 = vld [vmem:[%s1480_s1 + $0x218] sm:$0xff]  ;;  %v31_v54 = vld [vmem:[%s1479_s0 + $0x50] sm:$0xff]  ;;  %vm567_vm1 = vcmask 261120   ;;  %vm597_vm2 = vcmask 1041409   ;;  %s938_s25 = smov [#allocation2]  }
  0x3b   :  { %824 = vmatprep.subr.mxu1 %v156_v47  ;;  %789 = vmatpush3.msra.mxu0 %v107_v48  ;;  %v139_v53 = vld [vmem:[%s1480_s1 + $0x320] sm:$0xff]  ;;  %v121_v55 = vld [vmem:[%s1480_s1 + $0x290] sm:$0xff]  ;;  %v154_v56 = vld [vmem:[%s1480_s1 + $0x398] sm:$0xff]  ;;  %s679_s26 = sshll.u32 %s938_s25, 4  ;;  %vm671_vm3 = vcmask 74752   ;;  %s680_s26 = int_to_ptr.vmem [resolvable:$true] %s679_s26 }
  0x3c   :  { %825 = vmatpush3.msra.mxu1 %v140_v49  ;;  %790 = vmatprep.subr.mxu0 %v122_v50  ;;  %v30_v57 = vld [vmem:[%s1479_s0 + $0x48] sm:$0xff]  ;;  %v138_v58 = vld [vmem:[%s1480_s1 + $0x318] sm:$0xff]  ;;  %v105_v59 = vld [vmem:[%s1480_s1 + $0x210] sm:$0xff]  ;;  %s914_s27 = scalar_lea.vmem %s680_s26, 32  ;;  %p919_p1 = scmp.lt.s32.totalorder %s680_s26, %s680_s26 }
  0x3d   :  { %826 = vmatprep.subr.mxu1 %v155_v51  ;;  %791 = vmatpush3.msra.mxu0 %v106_v52  ;;  %v33_v60 = vld [vmem:[%s1479_s0 + $0x60] sm:$0xff]  ;;  %v120_v61 = vld [vmem:[%s1480_s1 + $0x288] sm:$0xff]  ;;  %v153_v62 = vld [vmem:[%s1480_s1 + $0x390] sm:$0xff]  ;;  %p915_p0 = scmp.ne.s32.totalorder %s680_s26, %s914_s27  ;;  %p920_p2 = scmp.lt.s32.totalorder %s914_s27, %s914_s27 }
  0x3e   :  { %827 = vmatpush3.msra.mxu1 %v139_v53  ;;  %259 = vmatprep.mubr.f32.mxu0 %v31_v54  ;;  %v32_v63 = vld [vmem:[%s1479_s0 + $0x58] sm:$0xff]  ;;  %v104_v0 = vld [vmem:[%s1480_s1 + $0x208] sm:$0xff]  ;;  %v137_v1 = vld [vmem:[%s1480_s1 + $0x310] sm:$0xff] }
  0x3f   :  { %792 = vmatprep.subr.mxu0 %v121_v55  ;;  %828 = vmatprep.subr.mxu1 %v154_v56  ;;  %v119_v2 = vld [vmem:[%s1480_s1 + $0x280] sm:$0xff]  ;;  %v152_v3 = vld [vmem:[%s1480_s1 + $0x388] sm:$0xff]  ;;  %v182_v9 = vld [vmem:[%s1480_s1 + $0x478] sm:$0xff]  ;;  %p921_p3 = por %p920_p2, %p919_p1 }
  0x40   :  { %260 = vmatmul.mubr.f32.gmra.mxu0 %v30_v57  ;;  %829 = vmatpush3.msra.mxu1 %v138_v58  ;;  %v103_v4 = vld [vmem:[%s1480_s1 + $0x200] sm:$0xff]  ;;  %v26_v5 = vld [vmem:[%s1479_s0 + $0x28] sm:$0xff]  ;;  %v28_v11 = vld [vmem:[%s1479_s0 + $0x38] sm:$0xff] }
  0x41   :  { %793 = vmatpush3.msra.mxu0 %v105_v59  ;;  %334 = vmatprep.mubr.f32.mxu1 %v33_v60  ;;  %v136_v6 = vld [vmem:[%s1480_s1 + $0x308] sm:$0xff]  ;;  %v25_v7 = vld [vmem:[%s1479_s0 + $0x20] sm:$0xff]  ;;  %v27_v12 = vld [vmem:[%s1479_s0 + $0x30] sm:$0xff]  ;;  %p922_p4 = pnand %p921_p3, %p915_p0 }
  0x42   :  { %794 = vmatprep.subr.mxu0 %v120_v61  ;;  %830 = vmatprep.subr.mxu1 %v153_v62  ;;  %v151_v8 = vld [vmem:[%s1480_s1 + $0x380] sm:$0xff]  ;;  %v181_v13 = vld [vmem:[%s1480_s1 + $0x470] sm:$0xff]  ;;  %v34_v15 = vld [vmem:[%s1479_s0 + $0x68] sm:$0xff] }
  0x43   :  { %335 = vmatmul.mubr.f32.gmra.mxu1 %v32_v63  ;;  %795 = vmatpush3.msra.mxu0 %v104_v0  ;;  %v135_v10 = vld [vmem:[%s1480_s1 + $0x300] sm:$0xff]  ;;  %v35_v14 = vld [vmem:[%s1479_s0 + $0x70] sm:$0xff]  ;;  %v180_v16 = vld [vmem:[%s1480_s1 + $0x468] sm:$0xff] }
  0x44   :  { %831 = vmatpush3.msra.mxu1 %v137_v1  ;;  %796 = vmatprep.subr.mxu0 %v119_v2  ;;  %v37_v17 = vld [vmem:[%s1479_s0 + $0x80] sm:$0xff]  ;;  %v36_v18 = vld [vmem:[%s1479_s0 + $0x78] sm:$0xff]  ;;  %v177_v22 = vld [vmem:[%s1480_s1 + $0x450] sm:$0xff] }
  0x45   :  { %832 = vmatprep.subr.mxu1 %v152_v3  ;;  %797 = vmatpush3.msra.mxu0 %v103_v4  ;;  %v179_v19 = vld [vmem:[%s1480_s1 + $0x460] sm:$0xff]  ;;  %v178_v21 = vld [vmem:[%s1480_s1 + $0x458] sm:$0xff]  ;;  %v176_v23 = vld [vmem:[%s1480_s1 + $0x448] sm:$0xff] }
  0x46   :  { %404 = vmatprep.mubr.f32.mxu0 %v26_v5  ;;  %833 = vmatpush3.msra.mxu1 %v136_v6  ;;  %v29_v20 = vld [vmem:[%s1479_s0 + $0x40] sm:$0xff]  ;;  %v174_v25 = vld [vmem:[%s1480_s1 + $0x438] sm:$0xff]  ;;  %v173_v26 = vld [vmem:[%s1480_s1 + $0x430] sm:$0xff] }
  0x47   :  { %405 = vmatmul.mubr.f32.vlgmr.msra.gmra.mxu0 %v25_v7  ;;  %834 = vmatprep.subr.mxu1 %v151_v8  ;;  %v175_v24 = vld [vmem:[%s1480_s1 + $0x440] sm:$0xff]  ;;  %v172_v27 = vld [vmem:[%s1480_s1 + $0x428] sm:$0xff]  ;;  %v170_v29 = vld [vmem:[%s1480_s1 + $0x418] sm:$0xff] }
  0x48   :  { %865 = vmatprep.subr.mxu0 %v182_v9  ;;  %835 = vmatpush3.msra.mxu1 %v135_v10  ;;  %v171_v28 = vld [vmem:[%s1480_s1 + $0x420] sm:$0xff]  ;;  %v169_v30 = vld [vmem:[%s1480_s1 + $0x410] sm:$0xff]  ;;  %v168_v31 = vld [vmem:[%s1480_s1 + $0x408] sm:$0xff] }
  0x49   :  { %479 = vmatprep.mubr.f32.mxu1 %v28_v11  ;;  %866 = vmatpush3.msra.mxu0 %v182_v9  ;;  %v167_v32 = vld [vmem:[%s1480_s1 + $0x400] sm:$0xff]  ;;  %v38_v33 = vld [vmem:[%s1479_s0 + $0x88] sm:$0xff]  ;;  %v587_v35 = vld [vmem:[%s1482_s3 + $0x18] sm:$0xff] }
  0x4a   :  { %480 = vmatmul.mubr.f32.vlgmr.msra.gmra.mxu1 %v27_v12  ;;  %867 = vmatprep.subr.mxu0 %v181_v13  ;;  %v586_v36 = vld [vmem:[%s1482_s3 + $0x10] sm:$0xff]  ;;  %v585_v37 = vld [vmem:[%s1482_s3 + $0x8] sm:$0xff]  ;;  %v584_v38 = vld [vmem:[%s1482_s3] sm:$0xff] }
  0x4b   :  { %409 = vmatprep.mubr.f32.mxu0 %v35_v14  ;;  %868 = vmatpush3.msra.mxu0 %v181_v13  ;;  %v687_v54 = vld [vmem:[%s1481_s2] ss:$0 sm:$0xff] }
  0x4c   :  { %410 = vmatmul.mubr.f32.gmra.mxu0 %v34_v15  ;;  %869 = vmatprep.subr.mxu0 %v180_v16 }
  0x4d   :  { %484 = vmatprep.mubr.f32.mxu1 %v37_v17  ;;  %870 = vmatpush3.msra.mxu0 %v180_v16 }
  0x4e   :  { %485 = vmatmul.mubr.f32.gmra.mxu1 %v36_v18  ;;  %871 = vmatprep.subr.mxu0 %v179_v19 }
  0x4f   :  { %872 = vmatpush3.msra.mxu0 %v179_v19  ;;  %897 = vmatprep.mubr.f32.mxu0 %v29_v20 }
  0x50   :  { %873 = vmatprep.subr.mxu0 %v178_v21  ;;  %900 = vmatprep.subr.mxu1 %v936_v34 }
  0x51   :  { %874 = vmatpush3.msra.mxu0 %v178_v21  ;;  %901 = vmatpush3.msra.mxu1 %v587_v35 }
  0x52   :  { %875 = vmatprep.subr.mxu0 %v177_v22  ;;  %902 = vmatprep.subr.mxu1 %v936_v34 }
  0x53   :  { %876 = vmatpush3.msra.mxu0 %v177_v22  ;;  %903 = vmatpush3.msra.mxu1 %v586_v36 }
  0x54   :  { %877 = vmatprep.subr.mxu0 %v176_v23  ;;  %904 = vmatprep.subr.mxu1 %v936_v34 }
  0x55   :  { %878 = vmatpush3.msra.mxu0 %v176_v23  ;;  %905 = vmatpush3.msra.mxu1 %v585_v37 }
  0x56   :  { %879 = vmatprep.subr.mxu0 %v175_v24  ;;  %906 = vmatprep.subr.mxu1 %v936_v34 }
  0x57   :  { %880 = vmatpush3.msra.mxu0 %v175_v24  ;;  %908 = vmatprep.mubr.msk.f32.mxu1 %vm937_vm0, %v936_v34 }
  0x58   :  { %881 = vmatprep.subr.mxu0 %v174_v25  ;;  %907 = vmatpush3.msra.mxu1 %v584_v38 }
  0x59   :  { %882 = vmatpush3.msra.mxu0 %v174_v25 }
  0x5a   :  { %883 = vmatprep.subr.mxu0 %v173_v26 }
  0x5b   :  { %884 = vmatpush3.msra.mxu0 %v173_v26 }
  0x5c   :  { %885 = vmatprep.subr.mxu0 %v172_v27 }
  0x5d   :  { %886 = vmatpush3.msra.mxu0 %v172_v27 }
  0x5e   :  { %887 = vmatprep.subr.mxu0 %v171_v28 }
  0x5f   :  { %888 = vmatpush3.msra.mxu0 %v171_v28 }
  0x60   :  { %889 = vmatprep.subr.mxu0 %v170_v29 }
  0x61   :  { %890 = vmatpush3.msra.mxu0 %v170_v29 }
  0x62   :  { %891 = vmatprep.subr.mxu0 %v169_v30 }
  0x63   :  { %892 = vmatpush3.msra.mxu0 %v169_v30 }
  0x64   :  { %893 = vmatprep.subr.mxu0 %v168_v31 }
  0x65   :  { %894 = vmatpush3.msra.mxu0 %v168_v31  ;;  %v688_v31 = vld [vmem:[%s1483_s4] ss:$0 sm:$0xff] }
  0x66   :  { %895 = vmatprep.subr.mxu0 %v167_v32 }
  0x67   :  { %896 = vmatpush3.msra.mxu0 %v167_v32 }
  0x68   :  { %898 = vmatmul.mubr.f32.vlgmr.msra.gmra.mxu0 %v38_v33 }
  0xe2   :  { %v722_v39 = vpop.f32.mrf.mxu0 }
  0xe4   :  { %v723_v40 = vpop.f32.mrf.mxu0 }
  0xe5   :  { %v760_v41 = vpop.f32.mrf.mxu1  ;;  %v724_v53 = vadd.f32 %v723_v40, %v722_v39 }
  0xe7   :  { %v761_v43 = vpop.f32.mrf.mxu1  ;;  %v257_v59 = vadd.f32 %v724_v53, %v687_v54 }
  0xe8   :  { %v762_v60 = vadd.f32 %v761_v43, %v760_v41 }
  0xea   :  { %v332_v1 = vadd.f32 %v762_v60, %v257_v59 }
 0x100   :  { %v725_v42 = vpop.f32.mrf.mxu0 }
 0x102   :  { %v726_v44 = vpop.f32.mrf.mxu0 }
 0x103   :  { %v763_v45 = vpop.f32.mrf.mxu1  ;;  %v727_v52 = vadd.f32 %v726_v44, %v725_v42 }
 0x105   :  { %v764_v46 = vpop.f32.mrf.mxu1  ;;  %v262_v57 = vadd.f32 %v727_v52, %v687_v54 }
 0x106   :  { %v765_v58 = vadd.f32 %v764_v46, %v763_v45 }
 0x107   :  { %v798_v47 = vpop.f32.mrf.mxu0 }
 0x108   :  { %v337_v63 = vadd.f32 %v765_v58, %v262_v57 }
 0x109   :  { %v799_v48 = vpop.f32.mrf.mxu0 }
 0x10a   :  { %v836_v49 = vpop.f32.mrf.mxu1  ;;  %v800_v0 = vadd.f32 %v799_v48, %v798_v47 }
 0x10c   :  { %v801_v50 = vpop.f32.mrf.mxu0  ;;  %v837_v51 = vpop.f32.mrf.mxu1  ;;  %v407_v4 = vadd.f32 %v800_v0, %v332_v1 }
 0x10d   :  { %v838_v5 = vadd.f32 %v837_v51, %v836_v49 }
 0x10e   :  { %v802_v55 = vpop.f32.mrf.mxu0  ;;  %v839_v56 = vpop.f32.mrf.mxu1 }
 0x10f   :  { %v803_v61 = vadd.f32 %v802_v55, %v801_v50  ;;  %v482_v9 = vadd.f32 %v838_v5, %v407_v4 }
 0x110   :  { %v840_v62 = vpop.f32.mrf.mxu1 }
 0x111   :  { %v412_v2 = vadd.f32 %v803_v61, %v337_v63  ;;  %v841_v3 = vadd.f32 %v840_v62, %v839_v56 }
 0x113   :  { %v487_v6 = vadd.f32 %v841_v3, %v412_v2 }
 0x128   :  { %v899_v7 = vpop.f32.mrf.mxu0 }
 0x129   :  { %v562_v8 = vadd.f32 %v899_v7, %v487_v6 }
 0x12a   :  { %v556_v10 = vpop.f32.mrf.mxu0 }
 0x12b   :  { %v566_v11 = vmax.f32 %v562_v8, 0.0  ;;  %v557_v12 = vadd.f32 %v556_v10, %v482_v9 }
 0x12d   :  { %v575_v13 = vsel %vm567_vm1, %v566_v11, 0.0  ;;  %v565_v14 = vmax.f32 %v557_v12, 0.0 }
 0x12e   :  { %v576_v15 = vrot.slane %v575_v13, 4 }
 0x12f   :  { %v568_v16 = vsel %vm567_vm1, %v565_v14, 0.0 }
 0x130   :  { %v577_v17 = vadd.f32 %v576_v15, %v575_v13  ;;  %v569_v18 = vrot.slane %v568_v16, 4 }
 0x132   :  { %v578_v19 = vrot.slane %v577_v17, 2  ;;  %v570_v20 = vadd.f32 %v569_v18, %v568_v16 }
 0x134   :  { %v579_v21 = vadd.f32 %v578_v19, %v577_v17  ;;  %v571_v22 = vrot.slane %v570_v20, 2 }
 0x136   :  { %v580_v23 = vrot.slane %v579_v21, 1  ;;  %v572_v24 = vadd.f32 %v571_v22, %v570_v20 }
 0x138   :  { %v581_v25 = vadd.f32 %v580_v23, %v579_v21  ;;  %v573_v26 = vrot.slane %v572_v24, 1 }
 0x13a   :  { %v574_v27 = vadd.f32 %v573_v26, %v572_v24  ;;  %v583_v28 = vmul.f32 0.125, %v581_v25 }
 0x13c   :  { %v582_v29 = vmul.f32 0.125, %v574_v27 }
 0x13e   :  { %v598_v30 = vsel %vm597_vm2, %v583_v28, %v582_v29 }
 0x13f   :  { %909 = vmatmul.mubr.msk.f32.vlgmr.msra.gmra.mxu1 %vm567_vm1, %v598_v30 }
 0x1ff   :  { %v667_v32 = vpop.f32.mrf.mxu1 }
 0x200   :  { %v668_v33 = vadd.f32 %v688_v31, %v667_v32 }
 0x201   :  { %v910_v34 = vpop.f32.mrf.mxu1 }
 0x202   :  { %672 = vst.msk [vmem:[#allocation2] sm:$0x3] %vm671_vm3, %v668_v33 }
 0x203   :  { %925 = shalt.err (!%p922_p4)
}
 0x204   :  { %682 = dma.vmem_to_hbm [thread:$0]  %s680_s26, 32, %s1484_s5, [#allocation3]  }
 0x205   :  { %934 = dma.done.wait [#allocation3], 32  }
 0x206   :  { %935 = vsyncadd [#allocation3], 4294967264 }
 0x207   :  { %686 = vsyncpa [#allocation3], 1 }

</bundles_post_ra>
